<compile_context>
chip_gen: v5e
topology: v5e:2x2
jax: 0.10.0
libtpu: 0.0.40
codegen_flags: <defaults>
</compile_context>

<pallas_src>
import jax
import jax.numpy as jnp
from jax.experimental import pallas as pl
from jax.experimental.pallas import tpu as pltpu

LANE = 128
ROW_ALIGN = 32          # covers min sublane tile for f32(8)/bf16(16)/int8,fp8(32)
SOFTPLUS_THRESHOLD = 20.0


def _mish_kernel(x_ref, o_ref):
    x = x_ref[...].astype(jnp.float32)
    # tanh(softplus(x)) = ((1+e^x)^2 - 1) / ((1+e^x)^2 + 1)
    #                   = t*(t+2) / (t*(t+2) + 2),   t = e^x
    # Clamp the exp argument: for x > 20 the ratio is exactly 1.0 in f32
    # (y == x, matching F.softplus's threshold behavior) and exp never overflows.
    t = jnp.exp(jnp.minimum(x, SOFTPLUS_THRESHOLD))
    num = t * (t + 2.0)
    den = num + 2.0
    # Single EUP reciprocal push; two Newton steps on the (otherwise idle) VPU
    # restore full f32 accuracy essentially for free in this HBM-bound kernel.
    r = pl.reciprocal(den, approx=True)
    r = r * (2.0 - den * r)
    r = r * (2.0 - den * r)
    o_ref[...] = (x * num * r).astype(o_ref.dtype)


def _round_up(a: int, b: int) -> int:
    return -(-a // b) * b


def mish(x: jax.Array, *, target_block_bytes: int = 2 << 20) -> jax.Array:
    """Elementwise Mish; accepts any shape/float dtype, returns same shape/dtype."""
    orig_shape = x.shape
    orig_dtype = x.dtype
    n = x.size
    if n == 0:
        return x

    itemsize = jnp.dtype(orig_dtype).itemsize
    rows = pl.cdiv(n, LANE)

    # Rows per block targeting ~target_block_bytes per (double-buffered) buffer.
    tr_target = max(
        ROW_ALIGN,
        (target_block_bytes // (LANE * itemsize)) // ROW_ALIGN * ROW_ALIGN,
    )
    nb_size = pl.cdiv(rows, tr_target)        # blocks at ~target size each
    nb_cores = min(pl.cdiv(rows, 1024), 8)    # keep >=8 steps if blocks stay >=512 KiB-class
    nb = max(nb_size, nb_cores, 1)
    tr = _round_up(pl.cdiv(rows, nb), ROW_ALIGN)
    rows_padded = nb * tr
    padded_n = rows_padded * LANE

    flat = x.reshape(-1)
    if padded_n != n:
        # Ragged tail: pad with zeros (mish(0) == 0, sliced off below).
        flat = jnp.pad(flat, (0, padded_n - n))
    slab = flat.reshape(rows_padded, LANE)

    out = pl.pallas_call(
        _mish_kernel,
        out_shape=jax.ShapeDtypeStruct((rows_padded, LANE), orig_dtype),
        grid_spec=pltpu.PrefetchScalarGridSpec(
            num_scalar_prefetch=0,
            grid=(nb,),
            in_specs=[pl.BlockSpec((tr, LANE), lambda i: (i, 0))],
            out_specs=pl.BlockSpec((tr, LANE), lambda i: (i, 0)),
        ),
        compiler_params=pltpu.CompilerParams(
            dimension_semantics=("parallel",),
            # Big tiles need more than the scoped default (16 MiB on v5e);
            # 48 MiB still fits v7x's 64 MiB physical VMEM with headroom.
            vmem_limit_bytes=48 << 20,
        ),
    )(slab)

    out_flat = out.reshape(-1)
    if padded_n != n:
        out_flat = out_flat[:n]
    return out_flat.reshape(orig_shape)


def mish_ref(x):
    xf = x.astype(jnp.float32)
    return (xf * jnp.tanh(jnp.logaddexp(xf, 0.0))).astype(x.dtype)


if __name__ == "__main__":
    key = jax.random.PRNGKey(0)

    # Main case: NCHW like the PyTorch module.
    x = jax.random.normal(key, (2, 4, 16, 16), dtype=jnp.float32) * 3.0
    y = mish(x)
    jax.block_until_ready(y)
    y_ref = mish_ref(x)
    assert y.shape == x.shape and y.dtype == x.dtype
    assert jnp.allclose(y, y_ref, atol=1e-5, rtol=1e-5), "f32 mismatch vs reference"

    # Misaligned (non-multiple-of-128) size exercises the padded path.
    x2 = jax.random.normal(jax.random.PRNGKey(1), (3, 5, 7, 11), dtype=jnp.float32) * 4.0
    y2 = mish(x2)
    jax.block_until_ready(y2)
    assert jnp.allclose(y2, mish_ref(x2), atol=1e-5, rtol=1e-5), "misaligned mismatch"

    # bf16 path (kernel computes in f32, stores bf16).
    x3 = (jax.random.normal(jax.random.PRNGKey(2), (2, 4, 16, 16)) * 3.0).astype(jnp.bfloat16)
    y3 = mish(x3)
    jax.block_until_ready(y3)
    assert y3.dtype == jnp.bfloat16
    assert jnp.allclose(
        y3.astype(jnp.float32), mish_ref(x3).astype(jnp.float32), atol=2e-2, rtol=2e-2
    ), "bf16 mismatch"

    print("KERNEL_OK")
</pallas_src>

<mosaic_0001>
module attributes {stable_mosaic.version = 11 : i64} {
  func.func @_mish_kernel(%arg0: i32, %arg1: memref<32x128xf32, #tpu.memory_space<vmem>>, %arg2: memref<32x128xf32, #tpu.memory_space<vmem>>) attributes {dimension_semantics = [#tpu.dimension_semantics<parallel>], iteration_bounds = array<i64: 1>, scalar_prefetch = 0 : i64, scratch_operands = 0 : i64, tpu.core_type = #tpu.core_type<tc>, window_params = [{transform_indices = @transform_0, window_bounds = array<i64: 32, 128>}, {transform_indices = @transform_1, window_bounds = array<i64: 32, 128>}]} {
    %c0 = arith.constant 0 : index
    %c0_0 = arith.constant 0 : index
    %0 = vector.load %arg1[%c0, %c0_0] : memref<32x128xf32, #tpu.memory_space<vmem>>, vector<32x128xf32>
    %cst = arith.constant 2.000000e+01 : f32
    %1 = vector.broadcast %cst : f32 to vector<32x128xf32>
    %2 = arith.minimumf %0, %1 : vector<32x128xf32>
    %3 = math.exp %2 : vector<32x128xf32>
    %cst_1 = arith.constant 2.000000e+00 : f32
    %4 = vector.broadcast %cst_1 : f32 to vector<32x128xf32>
    %5 = arith.addf %3, %4 : vector<32x128xf32>
    %6 = arith.mulf %3, %5 : vector<32x128xf32>
    %cst_2 = arith.constant 2.000000e+00 : f32
    %7 = vector.broadcast %cst_2 : f32 to vector<32x128xf32>
    %8 = arith.addf %6, %7 : vector<32x128xf32>
    %9 = tpu.reciprocal %8 {approx = true} : vector<32x128xf32> -> vector<32x128xf32>
    %10 = arith.mulf %8, %9 : vector<32x128xf32>
    %cst_3 = arith.constant 2.000000e+00 : f32
    %11 = vector.broadcast %cst_3 : f32 to vector<32x128xf32>
    %12 = arith.subf %11, %10 : vector<32x128xf32>
    %13 = arith.mulf %9, %12 : vector<32x128xf32>
    %14 = arith.mulf %8, %13 : vector<32x128xf32>
    %cst_4 = arith.constant 2.000000e+00 : f32
    %15 = vector.broadcast %cst_4 : f32 to vector<32x128xf32>
    %16 = arith.subf %15, %14 : vector<32x128xf32>
    %17 = arith.mulf %13, %16 : vector<32x128xf32>
    %18 = arith.mulf %0, %6 : vector<32x128xf32>
    %19 = arith.mulf %18, %17 : vector<32x128xf32>
    %c0_5 = arith.constant 0 : index
    %c0_6 = arith.constant 0 : index
    %20 = vector.load %arg2[%c0_5, %c0_6] : memref<32x128xf32, #tpu.memory_space<vmem>>, vector<32x128xf32>
    tpu.vector_store %arg2[%c0_5, %c0_6], %19 {strides = array<i32>} : memref<32x128xf32, #tpu.memory_space<vmem>>, vector<32x128xf32>,
    return
  }
  func.func @transform_0(%arg0: i32) -> (i32, i32) {
    %c0_i32 = arith.constant 0 : i32
    %c0_i32_0 = arith.constant 0 : i32
    return %arg0, %c0_i32 : i32, i32
  }
  func.func @transform_1(%arg0: i32) -> (i32, i32) {
    %c0_i32 = arith.constant 0 : i32
    %c0_i32_0 = arith.constant 0 : i32
    return %arg0, %c0_i32 : i32, i32
  }
}

</mosaic_0001>

<bundles_post_ra>
// kernel: tpu_custom_call.1
= control target key start
LH: loop header
LB: loop body
LE: loop exit
PB: predicated region body
PF: predicated region fallthrough
CT: control target
= control target key end

     0   :  { %6 = vsyncpa [#allocation3], 0  ;;  %s210_s0 = inlined_call_operand.hbm [shape: f32[32,128], index: 0, kind: input, shape index: {}]   ;;  %s211_s1 = inlined_call_operand.hbm [shape: f32[32,128], index: 1, kind: output, shape index: {}]  }
   0x1   :  { %7 = vsyncpa [#allocation4], 0  ;;  %s12_s8 = sshll.u32 %s210_s0, 4  ;;  %s184_s9 = smov [#allocation2]   ;;  %s13_s8 = int_to_ptr.hbm [resolvable:$true] %s12_s8 }
   0x2   :  { %s14_s10 = sshll.u32 %s184_s9, 4  ;;  %s185_s11 = smov 128   ;;  %s15_s10 = int_to_ptr.vmem [resolvable:$true] %s14_s10 }
   0x3   :  { %s186_s12 = smov 8  }
   0x4   :  { %20 = dma.hbm_to_vmem [thread:$0]  %s13_s8, 512, %s15_s10, [#allocation3], %s185_s11, %s185_s11, %s186_s12  }
   0x5   :  { %180 = dma.done.wait [#allocation3], 512  }
   0x6   :  { %181 = vsyncadd [#allocation3], 4294966784  ;;  %v25_v0 = vld [vmem:[#allocation2] sm:$0xff]  ;;  %v26_v1 = vld [vmem:[#allocation2 + $0x8] sm:$0xff]  ;;  %s187_s0 = smov [#allocation5]   ;;  %s99_s16 = sshll.u32 %s211_s1, 4  ;;  %s100_s16 = int_to_ptr.hbm [resolvable:$true] %s99_s16 }
   0x7   :  { %v27_v2 = vld [vmem:[#allocation2 + $0x10] sm:$0xff]  ;;  %v29_v3 = vmin.f32 %v25_v0, 20.0  ;;  %v30_v4 = vmin.f32 %v26_v1, 20.0  ;;  %v28_v6 = vld [vmem:[#allocation2 + $0x18] sm:$0xff]  ;;  %s97_s13 = sshll.u32 %s187_s0, 4  ;;  %s98_s13 = int_to_ptr.vmem [resolvable:$true] %s97_s13 }
   0x8   :  { %v31_v5 = vmin.f32 %v27_v2, 20.0  ;;  %v32_v7 = vmin.f32 %v28_v6, 20.0 }
   0x9   :  { %v33_v8 = vmul.f32 1.442695, %v29_v3  ;;  %v35_v9 = vmul.f32 1.442695, %v30_v4 }
   0xa   :  { %v37_v10 = vmul.f32 1.442695, %v31_v5  ;;  %v39_v11 = vmul.f32 1.442695, %v32_v7 }
   0xb   :  { %116 = vpow2.f32 %v33_v8 }
   0xc   :  { %118 = vpow2.f32 %v35_v9 }
   0xd   :  { %120 = vpow2.f32 %v37_v10 }
   0xe   :  { %122 = vpow2.f32 %v39_v11 }
  0x11   :  { %v117_v12 = vpop.eup %116 }
  0x12   :  { %v119_v13 = vpop.eup %118  ;;  %v41_v14 = vadd.f32 2.0, %v117_v12 }
  0x13   :  { %v121_v15 = vpop.eup %120  ;;  %v42_v16 = vadd.f32 2.0, %v119_v13 }
  0x14   :  { %v123_v17 = vpop.eup %122  ;;  %v45_v18 = vmul.f32 %v117_v12, %v41_v14  ;;  %v43_v19 = vadd.f32 2.0, %v121_v15 }
  0x15   :  { %v46_v20 = vmul.f32 %v119_v13, %v42_v16  ;;  %v44_v21 = vadd.f32 2.0, %v123_v17 }
  0x16   :  { %v49_v22 = vadd.f32 2.0, %v45_v18  ;;  %v47_v23 = vmul.f32 %v121_v15, %v43_v19  ;;  %v81_v47 = vmul.f32 %v45_v18, %v25_v0 }
  0x17   :  { %v50_v24 = vadd.f32 2.0, %v46_v20  ;;  %v48_v25 = vmul.f32 %v123_v17, %v44_v21  ;;  %v82_v50 = vmul.f32 %v46_v20, %v26_v1 }
  0x18   :  { %124 = vrcp.f32 %v49_v22  ;;  %v51_v26 = vadd.f32 2.0, %v47_v23  ;;  %v83_v54 = vmul.f32 %v47_v23, %v27_v2 }
  0x19   :  { %126 = vrcp.f32 %v50_v24  ;;  %v52_v27 = vadd.f32 2.0, %v48_v25  ;;  %v84_v57 = vmul.f32 %v48_v25, %v28_v6 }
  0x1a   :  { %128 = vrcp.f32 %v51_v26 }
  0x1b   :  { %130 = vrcp.f32 %v52_v27 }
  0x1e   :  { %v125_v28 = vpop.eup %124 }
  0x1f   :  { %v127_v29 = vpop.eup %126  ;;  %v57_v30 = vmul.f32 %v125_v28, %v49_v22 }
  0x20   :  { %v129_v31 = vpop.eup %128  ;;  %v58_v32 = vmul.f32 %v127_v29, %v50_v24 }
  0x21   :  { %v131_v33 = vpop.eup %130  ;;  %v61_v34 = vsub.f32 2.0, %v57_v30  ;;  %v59_v35 = vmul.f32 %v129_v31, %v51_v26 }
  0x22   :  { %v62_v36 = vsub.f32 2.0, %v58_v32  ;;  %v60_v37 = vmul.f32 %v131_v33, %v52_v27 }
  0x23   :  { %v65_v38 = vmul.f32 %v125_v28, %v61_v34  ;;  %v63_v39 = vsub.f32 2.0, %v59_v35 }
  0x24   :  { %v66_v40 = vmul.f32 %v127_v29, %v62_v36  ;;  %v64_v41 = vsub.f32 2.0, %v60_v37 }
  0x25   :  { %v69_v42 = vmul.f32 %v65_v38, %v49_v22  ;;  %v67_v43 = vmul.f32 %v129_v31, %v63_v39 }
  0x26   :  { %v70_v44 = vmul.f32 %v66_v40, %v50_v24  ;;  %v68_v45 = vmul.f32 %v131_v33, %v64_v41 }
  0x27   :  { %v73_v46 = vsub.f32 2.0, %v69_v42  ;;  %v71_v48 = vmul.f32 %v67_v43, %v51_v26 }
  0x28   :  { %v74_v49 = vsub.f32 2.0, %v70_v44  ;;  %v72_v51 = vmul.f32 %v68_v45, %v52_v27 }
  0x29   :  { %v77_v52 = vmul.f32 %v73_v46, %v65_v38  ;;  %v75_v53 = vsub.f32 2.0, %v71_v48 }
  0x2a   :  { %v78_v55 = vmul.f32 %v74_v49, %v66_v40  ;;  %v76_v56 = vsub.f32 2.0, %v72_v51 }
  0x2b   :  { %v85_v58 = vmul.f32 %v81_v47, %v77_v52  ;;  %v79_v59 = vmul.f32 %v75_v53, %v67_v43 }
  0x2c   :  { %v86_v60 = vmul.f32 %v82_v50, %v78_v55  ;;  %v80_v61 = vmul.f32 %v76_v56, %v68_v45 }
  0x2d   :  { %89 = vst [vmem:[#allocation5] sm:$0xff] %v85_v58  ;;  %v87_v62 = vmul.f32 %v83_v54, %v79_v59 }
  0x2e   :  { %90 = vst [vmem:[#allocation5 + $0x8] sm:$0xff] %v86_v60  ;;  %v88_v63 = vmul.f32 %v84_v57, %v80_v61 }
  0x2f   :  { %91 = vst [vmem:[#allocation5 + $0x10] sm:$0xff] %v87_v62 }
  0x30   :  { %92 = vst [vmem:[#allocation5 + $0x18] sm:$0xff] %v88_v63 }
  0x31   :  { %105 = dma.vmem_to_hbm [thread:$0]  %s98_s13, 512, %s100_s16, [#allocation4], %s185_s11, %s185_s11, %s186_s12  }
  0x32   :  { %182 = dma.done.wait [#allocation4], 512  }
  0x33   :  { %183 = vsyncadd [#allocation4], 4294966784 }
  0x34   :  { %110 = vsyncpa [#allocation3], 1 }
  0x35   :  { %111 = vsyncpa [#allocation4], 1 }

</bundles_post_ra>
